<compile_context>
chip_gen: v5e
topology: v5e:2x2
jax: 0.10.0
libtpu: 0.0.40
codegen_flags: <defaults>
</compile_context>

<pallas_src>
import math
import functools

import jax
import jax.numpy as jnp
from jax import lax
from jax.experimental import pallas as pl
from jax.experimental.pallas import tpu as pltpu


def make_positional_encoding(dim_model: int, max_len: int) -> jnp.ndarray:
    """Replicates the buffer built in PositionalEncoding.__init__ (shape (max_len, dim_model))."""
    positions = jnp.arange(0, max_len, dtype=jnp.float32)[:, None]            # (max_len, 1)
    division_term = jnp.exp(
        jnp.arange(0, dim_model, 2, dtype=jnp.float32) * (-math.log(10000.0) / dim_model)
    )                                                                          # (dim_model//2,)
    angles = positions * division_term                                         # (max_len, dim_model//2)
    pe = jnp.zeros((max_len, dim_model), dtype=jnp.float32)
    pe = pe.at[:, 0::2].set(jnp.sin(angles))
    pe = pe.at[:, 1::2].set(jnp.cos(angles))
    return pe


def _pe_dropout_kernel(seed_ref, x_ref, pe_ref, o_ref, *, p: float, training: bool):
    # x_ref: (tS, B, D), pe_ref: (tS, D), o_ref: (tS, B, D)
    x = x_ref[...]                       # keep input dtype (bf16 stays bf16)
    pe = pe_ref[...]                     # (tS, D), already cast to x dtype
    y = x + pe[:, None, :]               # lazy broadcast over batch axis

    if training and p > 0.0:
        # Stateless inverted dropout: hash(global element index, seed) -> keep mask.
        # TODO(synk): PyTorch's dropout RNG stream cannot be bit-reproduced; the
        # semantics (Bernoulli(1-p) keep mask, 1/(1-p) scaling) are preserved.
        tS, B, D = x_ref.shape
        row0 = pl.program_id(0) * tS                       # global seq offset of this tile
        s_idx = lax.broadcasted_iota(jnp.int32, (tS, B, D), 0) + row0
        b_idx = lax.broadcasted_iota(jnp.int32, (tS, B, D), 1)
        d_idx = lax.broadcasted_iota(jnp.int32, (tS, B, D), 2)
        gidx = ((s_idx * B + b_idx) * D + d_idx).astype(jnp.uint32)

        seed_u = seed_ref[0].astype(jnp.uint32)
        h = gidx + seed_u * jnp.uint32(0x9E3779B9)
        # 32-bit integer mixer (murmur-style finalizer), all VPU int ops.
        h = h ^ (h >> jnp.uint32(16))
        h = h * jnp.uint32(0x7FEB352D)
        h = h ^ (h >> jnp.uint32(15))
        h = h * jnp.uint32(0x846CA68B)
        h = h ^ (h >> jnp.uint32(16))

        # Integer threshold compare (no float conversion): r uniform in [0, 2^24).
        r = (h >> jnp.uint32(8)).astype(jnp.int32)
        thresh = jnp.int32(int(round(p * float(1 << 24))))
        keep = r >= thresh                                  # P(keep) = 1 - p
        scale = jnp.asarray(1.0 / (1.0 - p), dtype=y.dtype)
        y = jnp.where(keep, y * scale, jnp.zeros_like(y))

    o_ref[...] = y.astype(o_ref.dtype)


def positional_encoding_forward(
    token_embedding: jnp.ndarray,      # (S, B, D)
    pe_table: jnp.ndarray,             # (max_len, D)
    *,
    dropout_percent: float = 0.1,
    training: bool = False,
    seed: int = 0,
) -> jnp.ndarray:
    S, B, D = token_embedding.shape
    dtype = token_embedding.dtype
    pe_slice = pe_table[:S].astype(dtype)        # positional_enc[:x.size(0)], cast to x dtype
    seed_arr = jnp.asarray([seed], dtype=jnp.int32)

    # Sequence-axis tiling: target ~2 MiB per x tile so the double-buffered
    # footprint (2*x + 2*out + pe) stays well under scoped VMEM on all chips.
    bytes_per_row = B * D * jnp.dtype(dtype).itemsize
    tS = max(1, min(S, (2 * 1024 * 1024) // max(1, bytes_per_row)))
    if tS < S:
        # Keep the PE block's sublane dim (tS) a multiple of 8.
        tS = min(S, max(8, (tS // 8) * 8))
    num_tiles = pl.cdiv(S, tS)

    kernel = functools.partial(
        _pe_dropout_kernel, p=float(dropout_percent), training=bool(training)
    )

    grid_spec = pltpu.PrefetchScalarGridSpec(
        num_scalar_prefetch=1,                 # seed scalar lands in SMEM
        grid=(num_tiles,),
        in_specs=[
            pl.BlockSpec((tS, B, D), lambda i, seed_ref: (i, 0, 0)),   # x tile
            pl.BlockSpec((tS, D), lambda i, seed_ref: (i, 0)),         # pe tile
        ],
        out_specs=pl.BlockSpec((tS, B, D), lambda i, seed_ref: (i, 0, 0)),
    )

    return pl.pallas_call(
        kernel,
        out_shape=jax.ShapeDtypeStruct((S, B, D), dtype),
        grid_spec=grid_spec,
        compiler_params=pltpu.CompilerParams(
            dimension_semantics=("parallel",),          # shard tiles across TCs (v7x)
            vmem_limit_bytes=32 * 1024 * 1024,          # headroom for double-buffered tiles
        ),
    )(seed_arr, token_embedding, pe_slice)


if __name__ == "__main__":
    # Small deterministic example: seq=16, batch=2, dim_model=128 (lane-dense), max_len=64.
    S, B, D, MAX_LEN = 16, 2, 128, 64

    key = jax.random.PRNGKey(0)
    x = jax.random.normal(key, (S, B, D), dtype=jnp.float32)

    pe_table = make_positional_encoding(D, MAX_LEN)

    # Eval-mode forward (dropout is identity), matching module.eval() semantics.
    out = positional_encoding_forward(x, pe_table, dropout_percent=0.1, training=False)
    out = jax.block_until_ready(out)

    ref = x + pe_table[:S][:, None, :]
    assert out.shape == (S, B, D)
    assert jnp.allclose(out, ref, atol=1e-5), "eval-mode mismatch vs reference"

    # Training (dropout) path: kept entries must equal ref * 1/(1-p), dropped are 0.
    out_train = positional_encoding_forward(
        x, pe_table, dropout_percent=0.1, training=True, seed=1234
    )
    out_train = jax.block_until_ready(out_train)
    keep_mask = out_train != 0.0
    scale = 1.0 / (1.0 - 0.1)
    assert jnp.allclose(
        jnp.where(keep_mask, out_train, 0.0),
        jnp.where(keep_mask, ref * scale, 0.0),
        atol=1e-4,
    ), "training-mode kept values mismatch"

    print("KERNEL_OK")
</pallas_src>

<mosaic_0001>
module attributes {stable_mosaic.version = 11 : i64} {
  func.func @_pe_dropout_kernel(%arg0: i32, %arg1: memref<1xi32, #tpu.memory_space<smem>>, %arg2: memref<16x2x128xf32, #tpu.memory_space<vmem>>, %arg3: memref<16x128xf32, #tpu.memory_space<vmem>>, %arg4: memref<16x2x128xf32, #tpu.memory_space<vmem>>) attributes {dimension_semantics = [#tpu.dimension_semantics<parallel>], iteration_bounds = array<i64: 1>, scalar_prefetch = 1 : i64, scratch_operands = 0 : i64, tpu.core_type = #tpu.core_type<tc>, window_params = [{transform_indices = @transform_0, window_bounds = array<i64: 16, 2, 128>}, {transform_indices = @transform_1, window_bounds = array<i64: 16, 128>}, {transform_indices = @transform_2, window_bounds = array<i64: 16, 2, 128>}]} {
    %c0 = arith.constant 0 : index
    %c0_0 = arith.constant 0 : index
    %c0_1 = arith.constant 0 : index
    %0 = vector.load %arg2[%c0, %c0_0, %c0_1] : memref<16x2x128xf32, #tpu.memory_space<vmem>>, vector<16x2x128xf32>
    %c0_2 = arith.constant 0 : index
    %c0_3 = arith.constant 0 : index
    %1 = vector.load %arg3[%c0_2, %c0_3] : memref<16x128xf32, #tpu.memory_space<vmem>>, vector<16x128xf32>
    %2 = vector.shape_cast %1 : vector<16x128xf32> to vector<16x1x128xf32>
    %3 = vector.broadcast %2 : vector<16x1x128xf32> to vector<16x2x128xf32>
    %4 = arith.addf %0, %3 : vector<16x2x128xf32>
    %c0_4 = arith.constant 0 : index
    %c0_5 = arith.constant 0 : index
    %c0_6 = arith.constant 0 : index
    %5 = vector.load %arg4[%c0_4, %c0_5, %c0_6] : memref<16x2x128xf32, #tpu.memory_space<vmem>>, vector<16x2x128xf32>
    tpu.vector_store %arg4[%c0_4, %c0_5, %c0_6], %4 {strides = array<i32>} : memref<16x2x128xf32, #tpu.memory_space<vmem>>, vector<16x2x128xf32>,
    return
  }
  func.func @transform_0(%arg0: i32, %arg1: memref<1xi32, #tpu.memory_space<smem>>) -> (i32, i32, i32) {
    %c0_i32 = arith.constant 0 : i32
    %c0_i32_0 = arith.constant 0 : i32
    %c0_i32_1 = arith.constant 0 : i32
    return %arg0, %c0_i32, %c0_i32_0 : i32, i32, i32
  }
  func.func @transform_1(%arg0: i32, %arg1: memref<1xi32, #tpu.memory_space<smem>>) -> (i32, i32) {
    %c0_i32 = arith.constant 0 : i32
    %c0_i32_0 = arith.constant 0 : i32
    return %arg0, %c0_i32 : i32, i32
  }
  func.func @transform_2(%arg0: i32, %arg1: memref<1xi32, #tpu.memory_space<smem>>) -> (i32, i32, i32) {
    %c0_i32 = arith.constant 0 : i32
    %c0_i32_0 = arith.constant 0 : i32
    %c0_i32_1 = arith.constant 0 : i32
    return %arg0, %c0_i32, %c0_i32_0 : i32, i32, i32
  }
}

</mosaic_0001>

<bundles_post_ra>
// kernel: tpu_custom_call.1
= control target key start
LH: loop header
LB: loop body
LE: loop exit
PB: predicated region body
PF: predicated region fallthrough
CT: control target
= control target key end

     0   :  { %9 = vsyncpa [#allocation5], 0  ;;  %s291_s0 = inlined_call_operand.<no memory space> [shape: s32[1], index: 0, kind: input, shape index: {}]   ;;  %s292_s1 = inlined_call_operand.hbm [shape: f32[16,2,128], index: 1, kind: input, shape index: {}]   ;;  %s293_s2 = inlined_call_operand.hbm [shape: f32[16,128], index: 2, kind: input, shape index: {}]   ;;  %s294_s3 = inlined_call_operand.hbm [shape: f32[16,2,128], index: 3, kind: output, shape index: {}]  }
   0x1   :  { %10 = vsyncpa [#allocation8], 0 }
   0x2   :  { %11 = vsyncpa [#allocation6], 0  ;;  %s16_s14 = sshll.u32 %s292_s1, 4  ;;  %s249_s15 = smov [#allocation4]   ;;  %s17_s14 = int_to_ptr.hbm [resolvable:$true] %s16_s14 }
   0x3   :  { %s18_s16 = sshll.u32 %s249_s15, 4  ;;  %s29_s18 = sshll.u32 %s293_s2, 4  ;;  %s19_s16 = int_to_ptr.vmem [resolvable:$true] %s18_s16  ;;  %s30_s18 = int_to_ptr.hbm [resolvable:$true] %s29_s18 }
   0x4   :  { %s250_s19 = smov 32   ;;  %s251_s20 = smov 2  }
   0x5   :  { %24 = dma.hbm_to_vmem [thread:$0]  %s17_s14, 512, %s19_s16, [#allocation5], %s250_s19, %s250_s19, %s251_s20  }
   0x6   :  { %s252_s21 = smov [#allocation7]   ;;  %s253_s23 = smov 128  }
   0x7   :  { %s31_s22 = sshll.u32 %s252_s21, 4  ;;  %s254_s1 = smov 8   ;;  %s32_s22 = int_to_ptr.vmem [resolvable:$true] %s31_s22 }
   0x8   :  { %37 = dma.hbm_to_vmem [thread:$0]  %s30_s18, 256, %s32_s22, [#allocation8], %s253_s23, %s253_s23, %s254_s1  }
   0x9   :  { %243 = dma.done.wait [#allocation5], 512  }
   0xa   :  { %244 = vsyncadd [#allocation5], 4294966784 }
   0xb   :  { %245 = dma.done.wait [#allocation8], 256  }
   0xc   :  { %246 = vsyncadd [#allocation8], 4294967040  ;;  %v46_v0 = vld [vmem:[#allocation4] sm:$0x3]  ;;  %v47_v2 = vld [vmem:[#allocation4 + $0x2] sm:$0x3] }
   0xd   :  { %v62_v1 = vld [vmem:[#allocation7] sm:$0xff]  ;;  %v50_v9 = vld [vmem:[#allocation4 + $0x8] sm:$0x3]  ;;  %v51_v16 = vld [vmem:[#allocation4 + $0xa] sm:$0x3]  ;;  %s255_s2 = smov [#allocation9]  }
   0xe   :  { %v80_v3 = vperm.slane %v62_v1, 0  ;;  %v66_v4 = vrot.slane %v62_v1, 1  ;;  %v48_v5 = vld [vmem:[#allocation4 + $0x4] sm:$0x3]  ;;  %v67_v6 = vrot.slane %v62_v1, 2  ;;  %v68_v7 = vrot.slane %v62_v1, 3 }
   0xf   :  { %v49_v8 = vld [vmem:[#allocation4 + $0x6] sm:$0x3]  ;;  %v69_v10 = vrot.slane %v62_v1, 4  ;;  %v70_v11 = vrot.slane %v62_v1, 5  ;;  %v71_v19 = vrot.slane %v62_v1, 6  ;;  %v72_v20 = vrot.slane %v62_v1, 7 }
  0x10   :  { %v112_v12 = vadd.f32 %v80_v3, %v46_v0  ;;  %v81_v13 = vperm.slane %v66_v4, 0  ;;  %v82_v14 = vperm.slane %v67_v6, 0  ;;  %v83_v15 = vperm.slane %v68_v7, 0  ;;  %v63_v21 = vld [vmem:[#allocation7 + $0x8] sm:$0xff]  ;;  %v54_v31 = vld [vmem:[#allocation4 + $0x10] sm:$0x3] }
  0x11   :  { %v84_v17 = vperm.slane %v69_v10, 0  ;;  %v85_v18 = vperm.slane %v70_v11, 0  ;;  %v52_v25 = vld [vmem:[#allocation4 + $0xc] sm:$0x3]  ;;  %v86_v28 = vperm.slane %v71_v19, 0  ;;  %v87_v30 = vperm.slane %v72_v20, 0 }
  0x12   :  { %128 = vst [vmem:[#allocation9] sm:$0x3] %v112_v12  ;;  %v113_v22 = vadd.f32 %v81_v13, %v47_v2  ;;  %v114_v23 = vadd.f32 %v82_v14, %v48_v5  ;;  %v115_v24 = vadd.f32 %v83_v15, %v49_v8  ;;  %v53_v29 = vld [vmem:[#allocation4 + $0xe] sm:$0x3]  ;;  %v88_v32 = vperm.slane %v63_v21, 0  ;;  %s148_s24 = sshll.u32 %s255_s2, 4  ;;  %s149_s24 = int_to_ptr.vmem [resolvable:$true] %s148_s24 }
  0x13   :  { %v116_v26 = vadd.f32 %v84_v17, %v50_v9  ;;  %v117_v27 = vadd.f32 %v85_v18, %v51_v16  ;;  %v73_v33 = vrot.slane %v63_v21, 1  ;;  %v74_v34 = vrot.slane %v63_v21, 2  ;;  %v55_v37 = vld [vmem:[#allocation4 + $0x12] sm:$0x3]  ;;  %v56_v38 = vld [vmem:[#allocation4 + $0x14] sm:$0x3] }
  0x14   :  { %129 = vst [vmem:[#allocation9 + $0x2] sm:$0x3] %v113_v22  ;;  %v75_v35 = vrot.slane %v63_v21, 3  ;;  %v118_v36 = vadd.f32 %v86_v28, %v52_v25  ;;  %v119_v39 = vadd.f32 %v87_v30, %v53_v29  ;;  %v120_v43 = vadd.f32 %v88_v32, %v54_v31  ;;  %v57_v44 = vld [vmem:[#allocation4 + $0x16] sm:$0x3]  ;;  %s150_s27 = sshll.u32 %s294_s3, 4  ;;  %s151_s27 = int_to_ptr.hbm [resolvable:$true] %s150_s27 }
  0x15   :  { %130 = vst [vmem:[#allocation9 + $0x4] sm:$0x3] %v114_v23  ;;  %v89_v40 = vperm.slane %v73_v33, 0  ;;  %v90_v41 = vperm.slane %v74_v34, 0  ;;  %v76_v45 = vrot.slane %v63_v21, 4  ;;  %v77_v46 = vrot.slane %v63_v21, 5 }
  0x16   :  { %131 = vst [vmem:[#allocation9 + $0x6] sm:$0x3] %v115_v24  ;;  %v91_v42 = vperm.slane %v75_v35, 0  ;;  %v58_v48 = vld [vmem:[#allocation4 + $0x18] sm:$0x3]  ;;  %v78_v49 = vrot.slane %v63_v21, 6 }
  0x17   :  { %132 = vst [vmem:[#allocation9 + $0x8] sm:$0x3] %v116_v26  ;;  %v121_v47 = vadd.f32 %v89_v40, %v55_v37  ;;  %v122_v50 = vadd.f32 %v90_v41, %v56_v38  ;;  %v92_v51 = vperm.slane %v76_v45, 0  ;;  %v59_v52 = vld [vmem:[#allocation4 + $0x1a] sm:$0x3]  ;;  %v93_v53 = vperm.slane %v77_v46, 0 }
  0x18   :  { %133 = vst [vmem:[#allocation9 + $0xa] sm:$0x3] %v117_v27  ;;  %v123_v54 = vadd.f32 %v91_v42, %v57_v44  ;;  %v60_v55 = vld [vmem:[#allocation4 + $0x1c] sm:$0x3]  ;;  %v94_v56 = vperm.slane %v78_v49, 0  ;;  %v79_v57 = vrot.slane %v63_v21, 7 }
  0x19   :  { %134 = vst [vmem:[#allocation9 + $0xc] sm:$0x3] %v118_v36  ;;  %v124_v58 = vadd.f32 %v92_v51, %v58_v48  ;;  %v61_v59 = vld [vmem:[#allocation4 + $0x1e] sm:$0x3]  ;;  %v125_v60 = vadd.f32 %v93_v53, %v59_v52 }
  0x1a   :  { %135 = vst [vmem:[#allocation9 + $0xe] sm:$0x3] %v119_v39  ;;  %v95_v61 = vperm.slane %v79_v57, 0  ;;  %v126_v62 = vadd.f32 %v94_v56, %v60_v55 }
  0x1b   :  { %136 = vst [vmem:[#allocation9 + $0x10] sm:$0x3] %v120_v43 }
  0x1c   :  { %137 = vst [vmem:[#allocation9 + $0x12] sm:$0x3] %v121_v47  ;;  %v127_v63 = vadd.f32 %v95_v61, %v61_v59 }
  0x1d   :  { %138 = vst [vmem:[#allocation9 + $0x14] sm:$0x3] %v122_v50 }
  0x1e   :  { %139 = vst [vmem:[#allocation9 + $0x16] sm:$0x3] %v123_v54 }
  0x1f   :  { %140 = vst [vmem:[#allocation9 + $0x18] sm:$0x3] %v124_v58 }
  0x20   :  { %141 = vst [vmem:[#allocation9 + $0x1a] sm:$0x3] %v125_v60 }
  0x21   :  { %142 = vst [vmem:[#allocation9 + $0x1c] sm:$0x3] %v126_v62 }
  0x22   :  { %143 = vst [vmem:[#allocation9 + $0x1e] sm:$0x3] %v127_v63 }
  0x23   :  { %156 = dma.vmem_to_hbm [thread:$0]  %s149_s24, 512, %s151_s27, [#allocation6], %s250_s19, %s250_s19, %s251_s20  }
  0x24   :  { %247 = dma.done.wait [#allocation6], 512  }
  0x25   :  { %248 = vsyncadd [#allocation6], 4294966784 }
  0x26   :  { %161 = vsyncpa [#allocation5], 1 }
  0x27   :  { %162 = vsyncpa [#allocation8], 1 }
  0x28   :  { %163 = vsyncpa [#allocation6], 1 }

</bundles_post_ra>
